<compile_context>
chip_gen: v5e
topology: v5e:2x2
jax: 0.10.0
libtpu: 0.0.40
codegen_flags: <defaults>
</compile_context>

<pallas_src>
import functools

import jax
import jax.numpy as jnp
from jax import lax
from jax.experimental import pallas as pl
from jax.experimental.pallas import tpu as pltpu


# --------------------------------------------------------------------------
# Kernel
# --------------------------------------------------------------------------
def _corr_attn_kernel(feat_ref, x_ref, out_ref, *, scale, channels, mxu_bf16):
    # feat_ref: (Nb, M, T)   raw row-major view of x (matches torch .view)
    # x_ref / out_ref: (Nb, C, T, V)
    mxu_dtype = (jnp.bfloat16
                 if (mxu_bf16 or feat_ref.dtype == jnp.bfloat16)
                 else jnp.float32)

    # ---- correlation over the raw-view "temporal" axis (centering in f32) ----
    feat = feat_ref[...].astype(jnp.float32)                       # (Nb, M, T)
    fc = (feat - jnp.mean(feat, axis=-1, keepdims=True)).astype(mxu_dtype)

    # corr[n, a, b] = sum_m fc[n, m, a] * fc[n, m, b]  (no materialized fc.T)
    corr = lax.dot_general(
        fc, fc,
        dimension_numbers=(((1,), (1,)), ((0,), (0,))),
        preferred_element_type=jnp.float32) * scale                # (Nb, T, T)

    # ---- row softmax in f32; denominator reciprocal on the idle EUP ----
    m = jnp.max(corr, axis=-1, keepdims=True)
    p = jnp.exp(corr - m)
    w = p * pl.reciprocal(jnp.sum(p, axis=-1, keepdims=True), approx=True)
    w_mxu = w.astype(mxu_dtype)

    # ---- agg + residual; per-channel matmul lands directly in out layout ----
    # agg[n, c, t, v] = sum_s w[n, t, s] * x[n, c, s, v]
    if channels <= 8:
        # Small C: static unroll, hoisted loads.
        x32 = x_ref[...].astype(jnp.float32)
        x_mxu = x_ref[...].astype(mxu_dtype)
        for c in range(channels):
            agg_c = lax.dot_general(
                w_mxu, x_mxu[:, c],
                dimension_numbers=(((2,), (1,)), ((0,), (0,))),
                preferred_element_type=jnp.float32)                # (Nb, T, V)
            out_ref[:, c] = (x32[:, c] + agg_c).astype(out_ref.dtype)
    else:
        # Large C: bound live ranges while keeping LLO scheduler visibility.
        def body(c, carry):
            xc = x_ref[:, c]
            agg_c = lax.dot_general(
                w_mxu, xc.astype(mxu_dtype),
                dimension_numbers=(((2,), (1,)), ((0,), (0,))),
                preferred_element_type=jnp.float32)
            out_ref[:, c] = (xc.astype(jnp.float32) + agg_c).astype(out_ref.dtype)
            return carry
        lax.fori_loop(0, channels, body, 0, unroll=True)


# --------------------------------------------------------------------------
# Sizing helpers (generation-aware)
# --------------------------------------------------------------------------
def _round_up(v: int, m: int) -> int:
    return ((v + m - 1) // m) * m


def _tpu_vmem_and_cores():
    """Best-effort (VMEM capacity, TensorCores per chip); safe fallbacks."""
    vmem_cap = 64 * 1024 * 1024
    cores = 1
    try:
        info = pltpu.get_tpu_info()
        cap = getattr(info, "vmem_capacity_bytes", None)
        if cap:
            vmem_cap = int(cap)
        for name in ("num_cores", "core_count", "num_tensorcores",
                     "tensorcore_count", "cores_per_chip"):
            v = getattr(info, name, None)
            if isinstance(v, int) and v > 0:
                cores = v
                break
        else:
            # Heuristic: 64 MiB/TC parts (v7x-class) ship 2 TensorCores/chip;
            # 128 MiB parts (v5e/v6e) are single-TC.
            cores = 2 if vmem_cap <= 80 * 1024 * 1024 else 1
    except Exception:
        pass
    return vmem_cap, cores


def _per_sample_vmem_bytes(C: int, T: int, V: int, itemsize: int) -> int:
    """Generous per-sample VMEM footprint: double-buffered blocks at their
    padded (lanes rounded to 128, sublanes to 8) layouts + f32 temporaries."""
    M = C * V
    Tl = _round_up(T, 128)
    Vl = _round_up(V, 128)
    Ms = _round_up(M, 8)
    Ts = _round_up(T, 8)
    feat_blk = Ms * Tl * itemsize                 # (M, T) input tile
    x_blk = C * Ts * Vl * itemsize                # (C, T, V) input tile
    out_blk = C * Ts * Vl * itemsize
    blocks = 2 * (feat_blk + x_blk + out_blk)     # pipeline double-buffering
    f32 = 4
    temps = (2 * Ms * Tl                          # feat f32 + centered/cast copy
             + 4 * Ts * _round_up(T, 128)         # corr, p, w, w_mxu
             + (C + 4) * Ts * Vl) * f32           # per-channel x/agg temporaries
    return blocks + temps


def _pick_batch_block(n: int, per_sample_bytes: int, budget_bytes: int,
                      target_steps: int) -> int:
    """Largest divisor of n fitting the budget while keeping >= target_steps
    grid steps when possible.  If even nb=1 overshoots, fall back to 1 (the
    vmem_limit keeps extra headroom over the budget)."""
    divisors = [d for d in range(1, n + 1) if n % d == 0]
    fit = [d for d in divisors if d * per_sample_bytes <= budget_bytes] or [1]
    good = [d for d in fit if n // d >= target_steps]
    return max(good) if good else max(fit)


# --------------------------------------------------------------------------
# Wrapper
# --------------------------------------------------------------------------
def corrnet_plus_features(x: jax.Array, in_channels: int,
                          *, mxu_bf16: bool = True) -> jax.Array:
    """Correlation-attention enhanced features, x: [N, C, T, V] -> [N, C, T, V]."""
    N, C, T, V = x.shape
    M = C * V
    # Combined scale: 1/sqrt(in_channels) from CorrNet, then /(C*V).
    scale = (1.0 / (in_channels ** 0.5)) / float(M)

    # Raw row-major view -- matches torch .view(n, c*v, t); free on HBM side.
    feat = x.reshape(N, M, T)

    itemsize = jnp.dtype(x.dtype).itemsize
    vmem_cap, cores = _tpu_vmem_and_cores()
    per_sample = _per_sample_vmem_bytes(C, T, V, itemsize)
    budget = int(0.40 * vmem_cap)
    vmem_limit = int(0.65 * vmem_cap)
    # Single-TC parts: no minimum step count (one big block is best).
    # Multi-TC parts: target >=4 steps per core for megacore + pipelining.
    target_steps = 1 if cores <= 1 else min(N, 4 * cores)
    nb = _pick_batch_block(N, per_sample, budget, target_steps)

    kernel = functools.partial(_corr_attn_kernel, scale=scale,
                               channels=C, mxu_bf16=mxu_bf16)

    return pl.pallas_call(
        kernel,
        out_shape=jax.ShapeDtypeStruct((N, C, T, V), x.dtype),
        grid_spec=pltpu.PrefetchScalarGridSpec(
            num_scalar_prefetch=0,
            grid=(N // nb,),
            in_specs=[
                pl.BlockSpec((nb, M, T), lambda n: (n, 0, 0)),
                pl.BlockSpec((nb, C, T, V), lambda n: (n, 0, 0, 0)),
            ],
            out_specs=pl.BlockSpec((nb, C, T, V), lambda n: (n, 0, 0, 0)),
        ),
        # Alias the x operand (input index 1) to the output: same shape/dtype
        # and each grid step reads its x block before writing the same block.
        input_output_aliases={1: 0},
        compiler_params=pltpu.CompilerParams(
            dimension_semantics=("parallel",),
            vmem_limit_bytes=vmem_limit,
        ),
    )(feat, x)


# --------------------------------------------------------------------------
# Pure-JAX reference and self-test
# --------------------------------------------------------------------------
def _reference(x: jax.Array, in_channels: int) -> jax.Array:
    """Pure-JAX reference of the correlation-attention block."""
    N, C, T, V = x.shape
    xf = x.astype(jnp.float32)
    feat = xf.reshape(N, C * V, T)
    feat = feat - jnp.mean(feat, axis=2, keepdims=True)
    corr = jnp.einsum('nmt,nms->nts', feat, feat) / (in_channels ** 0.5)
    corr = corr / (C * V)
    w = jax.nn.softmax(corr, axis=-1)
    agg = jnp.einsum('nts,ncsv->nctv', w, xf)
    return (xf + agg).astype(x.dtype)


# TODO(synk): STGCN encoder from models/corrnet.py is not provided in the
# reference; the forward here stops at the attention-enhanced features.


if __name__ == "__main__":
    key = jax.random.PRNGKey(0)
    N, C, T, V = 2, 4, 16, 16          # small shapes consistent with the module
    x = jax.random.normal(key, (N, C, T, V), dtype=jnp.float32)

    # Reference first (belt-and-braces against the aliased output buffer).
    ref = _reference(x, in_channels=C)

    out = corrnet_plus_features(x, in_channels=C)
    out = jax.block_until_ready(out)

    assert out.shape == (N, C, T, V)
    # bf16 MXU operands + approx reciprocal in the softmax denominator ->
    # slightly looser tolerance (still far below any structural error).
    assert jnp.allclose(out, ref, atol=3e-2, rtol=3e-2), "mismatch vs reference"

    print("KERNEL_OK")
</pallas_src>

<mosaic_0001>
module attributes {stable_mosaic.version = 11 : i64} {
  func.func @_corr_attn_kernel(%arg0: i32, %arg1: memref<2x64x16xf32, #tpu.memory_space<vmem>>, %arg2: memref<2x4x16x16xf32, #tpu.memory_space<vmem>>, %arg3: memref<2x4x16x16xf32, #tpu.memory_space<vmem>>) attributes {dimension_semantics = [#tpu.dimension_semantics<parallel>], iteration_bounds = array<i64: 1>, scalar_prefetch = 0 : i64, scratch_operands = 0 : i64, tpu.core_type = #tpu.core_type<tc>, window_params = [{transform_indices = @transform_0, window_bounds = array<i64: 2, 64, 16>}, {transform_indices = @transform_1, window_bounds = array<i64: 2, 4, 16, 16>}, {transform_indices = @transform_2, window_bounds = array<i64: 2, 4, 16, 16>}]} {
    %c0 = arith.constant 0 : index
    %c0_0 = arith.constant 0 : index
    %c0_1 = arith.constant 0 : index
    %0 = vector.load %arg1[%c0, %c0_0, %c0_1] : memref<2x64x16xf32, #tpu.memory_space<vmem>>, vector<2x64x16xf32>
    %cst = arith.constant dense<0.000000e+00> : vector<2x64xf32>
    %1 = vector.multi_reduction <add>, %0, %cst [2] : vector<2x64x16xf32> to vector<2x64xf32>
    %2 = vector.shape_cast %1 : vector<2x64xf32> to vector<2x64x1xf32>
    %cst_2 = arith.constant 1.600000e+01 : f32
    %3 = vector.broadcast %cst_2 : f32 to vector<2x64x1xf32>
    %4 = arith.divf %2, %3 : vector<2x64x1xf32>
    %5 = vector.broadcast %4 : vector<2x64x1xf32> to vector<2x64x16xf32>
    %6 = arith.subf %0, %5 : vector<2x64x16xf32>
    %7 = arith.truncf %6 : vector<2x64x16xf32> to vector<2x64x16xbf16>
    %cst_3 = arith.constant dense<0.000000e+00> : vector<2x16x16xf32>
    %8 = tpu.matmul %7, %7, %cst_3 {dimension_numbers = #tpu.dot_dimension_numbers<[1], [1], [2], [2], [0, 0, 0, 2, 1, 2], [0], [0]>} : vector<2x64x16xbf16>, vector<2x64x16xbf16>, vector<2x16x16xf32> -> vector<2x16x16xf32>
    %cst_4 = arith.constant 7.812500e-03 : f32
    %9 = vector.broadcast %cst_4 : f32 to vector<2x16x16xf32>
    %10 = arith.mulf %8, %9 : vector<2x16x16xf32>
    %cst_5 = arith.constant dense<0xFF800000> : vector<2x16xf32>
    %11 = vector.multi_reduction <maximumf>, %10, %cst_5 [2] : vector<2x16x16xf32> to vector<2x16xf32>
    %12 = vector.shape_cast %11 : vector<2x16xf32> to vector<2x16x1xf32>
    %13 = vector.broadcast %12 : vector<2x16x1xf32> to vector<2x16x16xf32>
    %14 = arith.subf %10, %13 : vector<2x16x16xf32>
    %15 = math.exp %14 : vector<2x16x16xf32>
    %cst_6 = arith.constant dense<0.000000e+00> : vector<2x16xf32>
    %16 = vector.multi_reduction <add>, %15, %cst_6 [2] : vector<2x16x16xf32> to vector<2x16xf32>
    %17 = vector.shape_cast %16 : vector<2x16xf32> to vector<2x16x1xf32>
    %18 = tpu.reciprocal %17 {approx = true} : vector<2x16x1xf32> -> vector<2x16x1xf32>
    %19 = vector.broadcast %18 : vector<2x16x1xf32> to vector<2x16x16xf32>
    %20 = arith.mulf %15, %19 : vector<2x16x16xf32>
    %21 = arith.truncf %20 : vector<2x16x16xf32> to vector<2x16x16xbf16>
    %c0_7 = arith.constant 0 : index
    %c0_8 = arith.constant 0 : index
    %c0_9 = arith.constant 0 : index
    %c0_10 = arith.constant 0 : index
    %22 = vector.load %arg2[%c0_7, %c0_8, %c0_9, %c0_10] : memref<2x4x16x16xf32, #tpu.memory_space<vmem>>, vector<2x4x16x16xf32>
    %c0_11 = arith.constant 0 : index
    %c0_12 = arith.constant 0 : index
    %c0_13 = arith.constant 0 : index
    %c0_14 = arith.constant 0 : index
    %23 = vector.load %arg2[%c0_11, %c0_12, %c0_13, %c0_14] : memref<2x4x16x16xf32, #tpu.memory_space<vmem>>, vector<2x4x16x16xf32>
    %24 = arith.truncf %23 : vector<2x4x16x16xf32> to vector<2x4x16x16xbf16>
    %25 = vector.extract_strided_slice %24 {offsets = [0, 0, 0, 0], sizes = [2, 1, 16, 16], strides = [1, 1, 1, 1]} : vector<2x4x16x16xbf16> to vector<2x1x16x16xbf16>
    %26 = vector.shape_cast %25 : vector<2x1x16x16xbf16> to vector<2x16x16xbf16>
    %cst_15 = arith.constant dense<0.000000e+00> : vector<2x16x16xf32>
    %27 = tpu.matmul %21, %26, %cst_15 {dimension_numbers = #tpu.dot_dimension_numbers<[2], [1], [1], [2], [0, 0, 0, 1, 1, 2], [0], [0]>} : vector<2x16x16xbf16>, vector<2x16x16xbf16>, vector<2x16x16xf32> -> vector<2x16x16xf32>
    %28 = vector.extract_strided_slice %22 {offsets = [0, 0, 0, 0], sizes = [2, 1, 16, 16], strides = [1, 1, 1, 1]} : vector<2x4x16x16xf32> to vector<2x1x16x16xf32>
    %29 = vector.shape_cast %28 : vector<2x1x16x16xf32> to vector<2x16x16xf32>
    %30 = arith.addf %29, %27 : vector<2x16x16xf32>
    %c0_16 = arith.constant 0 : index
    %c0_17 = arith.constant 0 : index
    %c0_18 = arith.constant 0 : index
    %c0_19 = arith.constant 0 : index
    %31 = vector.load %arg3[%c0_16, %c0_17, %c0_18, %c0_19] : memref<2x4x16x16xf32, #tpu.memory_space<vmem>>, vector<2x1x16x16xf32>
    %32 = vector.shape_cast %31 : vector<2x1x16x16xf32> to vector<2x16x16xf32>
    %33 = vector.shape_cast %30 : vector<2x16x16xf32> to vector<2x1x16x16xf32>
    tpu.vector_store %arg3[%c0_16, %c0_17, %c0_18, %c0_19], %33 {strides = array<i32>} : memref<2x4x16x16xf32, #tpu.memory_space<vmem>>, vector<2x1x16x16xf32>,
    %34 = vector.extract_strided_slice %24 {offsets = [0, 1, 0, 0], sizes = [2, 1, 16, 16], strides = [1, 1, 1, 1]} : vector<2x4x16x16xbf16> to vector<2x1x16x16xbf16>
    %35 = vector.shape_cast %34 : vector<2x1x16x16xbf16> to vector<2x16x16xbf16>
    %cst_20 = arith.constant dense<0.000000e+00> : vector<2x16x16xf32>
    %36 = tpu.matmul %21, %35, %cst_20 {dimension_numbers = #tpu.dot_dimension_numbers<[2], [1], [1], [2], [0, 0, 0, 1, 1, 2], [0], [0]>} : vector<2x16x16xbf16>, vector<2x16x16xbf16>, vector<2x16x16xf32> -> vector<2x16x16xf32>
    %37 = vector.extract_strided_slice %22 {offsets = [0, 1, 0, 0], sizes = [2, 1, 16, 16], strides = [1, 1, 1, 1]} : vector<2x4x16x16xf32> to vector<2x1x16x16xf32>
    %38 = vector.shape_cast %37 : vector<2x1x16x16xf32> to vector<2x16x16xf32>
    %39 = arith.addf %38, %36 : vector<2x16x16xf32>
    %c0_21 = arith.constant 0 : index
    %c1 = arith.constant 1 : index
    %c0_22 = arith.constant 0 : index
    %c0_23 = arith.constant 0 : index
    %40 = vector.load %arg3[%c0_21, %c1, %c0_22, %c0_23] : memref<2x4x16x16xf32, #tpu.memory_space<vmem>>, vector<2x1x16x16xf32>
    %41 = vector.shape_cast %40 : vector<2x1x16x16xf32> to vector<2x16x16xf32>
    %42 = vector.shape_cast %39 : vector<2x16x16xf32> to vector<2x1x16x16xf32>
    tpu.vector_store %arg3[%c0_21, %c1, %c0_22, %c0_23], %42 {strides = array<i32>} : memref<2x4x16x16xf32, #tpu.memory_space<vmem>>, vector<2x1x16x16xf32>,
    %43 = vector.extract_strided_slice %24 {offsets = [0, 2, 0, 0], sizes = [2, 1, 16, 16], strides = [1, 1, 1, 1]} : vector<2x4x16x16xbf16> to vector<2x1x16x16xbf16>
    %44 = vector.shape_cast %43 : vector<2x1x16x16xbf16> to vector<2x16x16xbf16>
    %cst_24 = arith.constant dense<0.000000e+00> : vector<2x16x16xf32>
    %45 = tpu.matmul %21, %44, %cst_24 {dimension_numbers = #tpu.dot_dimension_numbers<[2], [1], [1], [2], [0, 0, 0, 1, 1, 2], [0], [0]>} : vector<2x16x16xbf16>, vector<2x16x16xbf16>, vector<2x16x16xf32> -> vector<2x16x16xf32>
    %46 = vector.extract_strided_slice %22 {offsets = [0, 2, 0, 0], sizes = [2, 1, 16, 16], strides = [1, 1, 1, 1]} : vector<2x4x16x16xf32> to vector<2x1x16x16xf32>
    %47 = vector.shape_cast %46 : vector<2x1x16x16xf32> to vector<2x16x16xf32>
    %48 = arith.addf %47, %45 : vector<2x16x16xf32>
    %c0_25 = arith.constant 0 : index
    %c2 = arith.constant 2 : index
    %c0_26 = arith.constant 0 : index
    %c0_27 = arith.constant 0 : index
    %49 = vector.load %arg3[%c0_25, %c2, %c0_26, %c0_27] : memref<2x4x16x16xf32, #tpu.memory_space<vmem>>, vector<2x1x16x16xf32>
    %50 = vector.shape_cast %49 : vector<2x1x16x16xf32> to vector<2x16x16xf32>
    %51 = vector.shape_cast %48 : vector<2x16x16xf32> to vector<2x1x16x16xf32>
    tpu.vector_store %arg3[%c0_25, %c2, %c0_26, %c0_27], %51 {strides = array<i32>} : memref<2x4x16x16xf32, #tpu.memory_space<vmem>>, vector<2x1x16x16xf32>,
    %52 = vector.extract_strided_slice %24 {offsets = [0, 3, 0, 0], sizes = [2, 1, 16, 16], strides = [1, 1, 1, 1]} : vector<2x4x16x16xbf16> to vector<2x1x16x16xbf16>
    %53 = vector.shape_cast %52 : vector<2x1x16x16xbf16> to vector<2x16x16xbf16>
    %cst_28 = arith.constant dense<0.000000e+00> : vector<2x16x16xf32>
    %54 = tpu.matmul %21, %53, %cst_28 {dimension_numbers = #tpu.dot_dimension_numbers<[2], [1], [1], [2], [0, 0, 0, 1, 1, 2], [0], [0]>} : vector<2x16x16xbf16>, vector<2x16x16xbf16>, vector<2x16x16xf32> -> vector<2x16x16xf32>
    %55 = vector.extract_strided_slice %22 {offsets = [0, 3, 0, 0], sizes = [2, 1, 16, 16], strides = [1, 1, 1, 1]} : vector<2x4x16x16xf32> to vector<2x1x16x16xf32>
    %56 = vector.shape_cast %55 : vector<2x1x16x16xf32> to vector<2x16x16xf32>
    %57 = arith.addf %56, %54 : vector<2x16x16xf32>
    %c0_29 = arith.constant 0 : index
    %c3 = arith.constant 3 : index
    %c0_30 = arith.constant 0 : index
    %c0_31 = arith.constant 0 : index
    %58 = vector.load %arg3[%c0_29, %c3, %c0_30, %c0_31] : memref<2x4x16x16xf32, #tpu.memory_space<vmem>>, vector<2x1x16x16xf32>
    %59 = vector.shape_cast %58 : vector<2x1x16x16xf32> to vector<2x16x16xf32>
    %60 = vector.shape_cast %57 : vector<2x16x16xf32> to vector<2x1x16x16xf32>
    tpu.vector_store %arg3[%c0_29, %c3, %c0_30, %c0_31], %60 {strides = array<i32>} : memref<2x4x16x16xf32, #tpu.memory_space<vmem>>, vector<2x1x16x16xf32>,
    return
  }
  func.func @transform_0(%arg0: i32) -> (i32, i32, i32) {
    %c0_i32 = arith.constant 0 : i32
    %c0_i32_0 = arith.constant 0 : i32
    %c0_i32_1 = arith.constant 0 : i32
    return %arg0, %c0_i32, %c0_i32_0 : i32, i32, i32
  }
  func.func @transform_1(%arg0: i32) -> (i32, i32, i32, i32) {
    %c0_i32 = arith.constant 0 : i32
    %c0_i32_0 = arith.constant 0 : i32
    %c0_i32_1 = arith.constant 0 : i32
    %c0_i32_2 = arith.constant 0 : i32
    return %arg0, %c0_i32, %c0_i32_0, %c0_i32_1 : i32, i32, i32, i32
  }
  func.func @transform_2(%arg0: i32) -> (i32, i32, i32, i32) {
    %c0_i32 = arith.constant 0 : i32
    %c0_i32_0 = arith.constant 0 : i32
    %c0_i32_1 = arith.constant 0 : i32
    %c0_i32_2 = arith.constant 0 : i32
    return %arg0, %c0_i32, %c0_i32_0, %c0_i32_1 : i32, i32, i32, i32
  }
}

</mosaic_0001>

<bundles_post_ra>
// kernel: tpu_custom_call.1
= control target key start
LH: loop header
LB: loop body
LE: loop exit
PB: predicated region body
PF: predicated region fallthrough
CT: control target
= control target key end

     0   :  { %7 = vsyncpa [#allocation3], 0  ;;  %s968_s0 = inlined_call_operand.vmem [shape: f32[2,64,16], index: 0, kind: input, shape index: {}]   ;;  %s969_s1 = inlined_call_operand.hbm [shape: f32[2,4,16,16], index: 1, kind: input, shape index: {}, may-alias: {1,2}]   ;;  %s970_s2 = inlined_call_operand.hbm [shape: f32[2,4,16,16], index: 2, kind: output, shape index: {}, may-alias: {1,2}]  }
   0x1   :  { %8 = vsyncpa [#allocation4], 0  ;;  %s15_s11 = sshll.u32 %s969_s1, 4  ;;  %s670_s12 = smov [#allocation2]   ;;  %s16_s11 = int_to_ptr.hbm [resolvable:$true] %s15_s11 }
   0x2   :  { %s17_s13 = sshll.u32 %s670_s12, 4  ;;  %s671_s14 = smov 128   ;;  %s18_s13 = int_to_ptr.vmem [resolvable:$true] %s17_s13 }
   0x3   :  { %s672_s15 = smov 8  }
   0x4   :  { %23 = dma.hbm_to_vmem [thread:$0]  %s16_s11, 2048, %s18_s13, [#allocation3], %s671_s14, %s671_s14, %s672_s15  }
   0x5   :  { %666 = dma.done.wait [#allocation3], 2048  }
   0x6   :  { %667 = vsyncadd [#allocation3], 4294965248  ;;  %vm45_vm0 = vcmask 130048   ;;  %v37_v0 = vld [vmem:[%s968_s0 + $0x40] sm:$0xff]  ;;  %v707_v4 = vld [vmem:[%s968_s0 + $0x10] sm:$0xff]  ;;  %v673_v32 = vmov 16.0  }
   0x7   :  { %v29_v1 = vld [vmem:[%s968_s0] sm:$0xff]  ;;  %v70_v2 = vsel %vm45_vm0, %v37_v0, 0.0  ;;  %v52_v5 = vsel %vm45_vm0, %v707_v4, 0.0  ;;  %v38_v6 = vld [vmem:[%s968_s0 + $0x48] sm:$0xff]  ;;  %v720_v8 = vld [vmem:[%s968_s0 + $0x18] sm:$0xff]  ;;  %600 = vrcp.f32 %v673_v32  ;;  %vm189_vm2 = vcmask 523264  }
   0x8   :  { %v46_v3 = vsel %vm45_vm0, %v29_v1, 0.0  ;;  %71 = vadd.xlane.f32.xlu1 %v70_v2  ;;  %53 = vadd.xlane.f32.xlu2 %v52_v5  ;;  %v30_v7 = vld [vmem:[%s968_s0 + $0x8] sm:$0xff]  ;;  %v73_v9 = vsel %vm45_vm0, %v38_v6, 0.0  ;;  %v55_v11 = vsel %vm45_vm0, %v720_v8, 0.0  ;;  %v729_v12 = vld [vmem:[%s968_s0 + $0x58] sm:$0xff]  ;;  %v734_v13 = vld [vmem:[%s968_s0 + $0x50] sm:$0xff] }
   0x9   :  { %47 = vadd.xlane.f32.xlu0 %v46_v3  ;;  %v49_v10 = vsel %vm45_vm0, %v30_v7, 0.0  ;;  %v739_v14 = vld [vmem:[%s968_s0 + $0x20] sm:$0xff]  ;;  %v79_v15 = vsel %vm45_vm0, %v729_v12, 0.0  ;;  %v76_v16 = vsel %vm45_vm0, %v734_v13, 0.0  ;;  %v755_v19 = vld [vmem:[%s968_s0 + $0x28] sm:$0xff]  ;;  %v771_v24 = vld [vmem:[%s968_s0 + $0x38] sm:$0xff] }
   0xa   :  { %v58_v17 = vsel %vm45_vm0, %v739_v14, 0.0  ;;  %v750_v18 = vld [vmem:[%s968_s0 + $0x60] sm:$0xff]  ;;  %v760_v20 = vld [vmem:[%s968_s0 + $0x68] sm:$0xff]  ;;  %v61_v22 = vsel %vm45_vm0, %v755_v19, 0.0  ;;  %v776_v25 = vld [vmem:[%s968_s0 + $0x30] sm:$0xff]  ;;  %v67_v27 = vsel %vm45_vm0, %v771_v24, 0.0 }
   0xb   :  { %v82_v21 = vsel %vm45_vm0, %v750_v18, 0.0  ;;  %v85_v23 = vsel %vm45_vm0, %v760_v20, 0.0  ;;  %v781_v26 = vld [vmem:[%s968_s0 + $0x70] sm:$0xff]  ;;  %v64_v28 = vsel %vm45_vm0, %v776_v25, 0.0  ;;  %v792_v30 = vld [vmem:[%s968_s0 + $0x78] sm:$0xff]  ;;  %s674_s0 = smov [#allocation5]  }
   0xc   :  { %v88_v29 = vsel %vm45_vm0, %v781_v26, 0.0  ;;  %v91_v31 = vsel %vm45_vm0, %v792_v30, 0.0  ;;  %s563_s20 = sshll.u32 %s674_s0, 4  ;;  %s565_s23 = sshll.u32 %s970_s2, 4  ;;  %s564_s20 = int_to_ptr.vmem [resolvable:$true] %s563_s20  ;;  %s566_s23 = int_to_ptr.hbm [resolvable:$true] %s565_s23 }
   0xd   :  { %v601_v33 = vpop.eup %600 }
   0xe   :  { %v95_v34 = vmul.f32 16.0, %v601_v33  ;;  %vm99_vm1 = vweird.f32 %v601_v33 }
  0x10   :  { %74 = vadd.xlane.f32.xlu1 %v73_v9  ;;  %56 = vadd.xlane.f32.xlu2 %v55_v11  ;;  %v96_v35 = vsub.f32 1.0, %v95_v34 }
  0x11   :  { %50 = vadd.xlane.f32.xlu0 %v49_v10 }
  0x12   :  { %v97_v36 = vmul.f32 %v601_v33, %v96_v35 }
  0x14   :  { %v98_v37 = vadd.f32 %v601_v33, %v97_v36 }
  0x16   :  { %v796_v38 = vsel %vm99_vm1, %v601_v33, %v98_v37 }
  0x18   :  { %80 = vadd.xlane.f32.xlu1 %v79_v15  ;;  %59 = vadd.xlane.f32.xlu2 %v58_v17 }
  0x19   :  { %77 = vadd.xlane.f32.xlu0 %v76_v16 }
  0x20   :  { %83 = vadd.xlane.f32.xlu1 %v82_v21  ;;  %86 = vadd.xlane.f32.xlu2 %v85_v23 }
  0x21   :  { %62 = vadd.xlane.f32.xlu0 %v61_v22 }
  0x28   :  { %68 = vadd.xlane.f32.xlu1 %v67_v27  ;;  %89 = vadd.xlane.f32.xlu2 %v88_v29 }
  0x29   :  { %65 = vadd.xlane.f32.xlu0 %v64_v28 }
  0x31   :  { %92 = vadd.xlane.f32.xlu0 %v91_v31 }
  0x7b   :  { %v72_v39 = vpop.xlane.xlu1 %71  ;;  %v54_v41 = vpop.xlane.xlu2 %53 }
  0x7c   :  { %v48_v40 = vpop.xlane.xlu0 %47  ;;  %v109_v42 = vmul.f32 %v796_v38, %v72_v39  ;;  %v103_v61 = vmul.f32 %v796_v38, %v54_v41 }
  0x7d   :  { %v101_v43 = vmul.f32 %v796_v38, %v48_v40 }
  0x7e   :  { %v125_v44 = vsub.f32 %v37_v0, %v109_v42  ;;  %v119_v10 = vsub.f32 %v707_v4, %v103_v61 }
  0x7f   :  { %v117_v45 = vsub.f32 %v29_v1, %v101_v43 }
  0x80   :  { %v141_v51 = vpack.c.bf16 %v125_v44, %v125_v44  ;;  %v135_v22 = vpack.c.bf16 %v119_v10, %v119_v10 }
  0x81   :  { %v133_v52 = vpack.c.bf16 %v117_v45, %v117_v45 }
  0x82   :  { %v215_v57 = vunpack.c.l.b16 %v141_v51  ;;  %v159_v31 = vunpack.c.l.b16 %v135_v22 }
  0x83   :  { %v75_v46 = vpop.xlane.xlu1 %74  ;;  %v57_v50 = vpop.xlane.xlu2 %56  ;;  %v157_v58 = vunpack.c.l.b16 %v133_v52 }
  0x84   :  { %v51_v47 = vpop.xlane.xlu0 %50  ;;  %v110_v48 = vmul.f32 %v796_v38, %v75_v46  ;;  %v104_v63 = vmul.f32 %v796_v38, %v57_v50 }
  0x85   :  { %v102_v49 = vmul.f32 %v796_v38, %v51_v47 }
  0x86   :  { %v126_v53 = vsub.f32 %v38_v6, %v110_v48  ;;  %v120_v11 = vsub.f32 %v720_v8, %v104_v63 }
  0x87   :  { %v118_v54 = vsub.f32 %v30_v7, %v102_v49 }
  0x88   :  { %v142_v55 = vpack.c.bf16 %v126_v53, %v126_v53  ;;  %v136_v23 = vpack.c.bf16 %v120_v11, %v120_v11 }
  0x89   :  { %v134_v56 = vpack.c.bf16 %v118_v54, %v118_v54 }
  0x8a   :  { %v216_v59 = vunpack.c.l.b16 %v142_v55 }
  0x8b   :  { %v158_v60 = vunpack.c.l.b16 %v134_v56  ;;  %v81_v62 = vpop.xlane.xlu1 %80  ;;  %v60_v6 = vpop.xlane.xlu2 %59 }
  0x8c   :  { %v78_v0 = vpop.xlane.xlu0 %77  ;;  %v112_v1 = vmul.f32 %v796_v38, %v81_v62  ;;  %v808_v5 = vpack.c.b16 %v216_v59, %v215_v57 }
  0x8d   :  { %v111_v2 = vmul.f32 %v796_v38, %v78_v0  ;;  %v806_v3 = vpack.c.b16 %v158_v60, %v157_v58 }
  0x8e   :  { %v128_v7 = vsub.f32 %v729_v12, %v112_v1  ;;  %v105_v12 = vmul.f32 %v796_v38, %v60_v6 }
  0x8f   :  { %v127_v9 = vsub.f32 %v734_v13, %v111_v2  ;;  %594 = vxpose.binary.xlu1.c.b16.start [1/8] (short) (narrow) %v808_v5, %v806_v3, 16  ;;  %v160_v13 = vunpack.c.l.b16 %v136_v23 }
  0x90   :  { %v144_v15 = vpack.c.bf16 %v128_v7, %v128_v7  ;;  %v121_v34 = vsub.f32 %v739_v14, %v105_v12 }
  0x91   :  { %v143_v16 = vpack.c.bf16 %v127_v9, %v127_v9  ;;  %v166_v37 = vpack.c.b16 %v160_v13, %v159_v31 }
  0x92   :  { %v218_v28 = vunpack.c.l.b16 %v144_v15  ;;  %v137_v47 = vpack.c.bf16 %v121_v34, %v121_v34 }
  0x93   :  { %v84_v17 = vpop.xlane.xlu1 %83  ;;  %v87_v27 = vpop.xlane.xlu2 %86  ;;  %v217_v29 = vunpack.c.l.b16 %v143_v16 }
  0x94   :  { %v63_v21 = vpop.xlane.xlu0 %62  ;;  %v113_v33 = vmul.f32 %v796_v38, %v84_v17  ;;  %v114_v8 = vmul.f32 %v796_v38, %v87_v27  ;;  %v161_v55 = vunpack.c.l.b16 %v137_v47 }
  0x95   :  { %v106_v32 = vmul.f32 %v796_v38, %v63_v21  ;;  %v224_v4 = vpack.c.b16 %v218_v28, %v217_v29 }
  0x96   :  { %v129_v43 = vsub.f32 %v750_v18, %v113_v33  ;;  %v130_v46 = vsub.f32 %v760_v20, %v114_v8 }
  0x97   :  { %v122_v39 = vsub.f32 %v755_v19, %v106_v32 }
  0x98   :  { %v145_v51 = vpack.c.bf16 %v129_v43, %v129_v43  ;;  %v146_v52 = vpack.c.bf16 %v130_v46, %v130_v46  ;;  %v856_v43 = vld [vmem:[#allocation2 + $0x8] sm:$0xff] }
  0x99   :  { %v138_v48 = vpack.c.bf16 %v122_v39, %v122_v39  ;;  %v333_v46 = vpack.c.bf16 %v856_v43, %v856_v43 }
  0x9a   :  { %v219_v58 = vunpack.c.l.b16 %v145_v51 }
  0x9b   :  { %v69_v35 = vpop.xlane.xlu1 %68  ;;  %v90_v42 = vpop.xlane.xlu2 %89  ;;  %v162_v20 = vunpack.c.l.b16 %v138_v48 }
  0x9c   :  { %v66_v36 = vpop.xlane.xlu0 %65  ;;  %v108_v40 = vmul.f32 %v796_v38, %v69_v35  ;;  %v115_v44 = vmul.f32 %v796_v38, %v90_v42  ;;  %v854_v42 = vld [vmem:[#allocation2] sm:$0xff] }
  0x9d   :  { %v107_v41 = vmul.f32 %v796_v38, %v66_v36  ;;  %v167_v61 = vpack.c.b16 %v162_v20, %v161_v55  ;;  %v874_v55 = vld [vmem:[#allocation2 + $0x60] sm:$0xff] }
  0x9e   :  { %v124_v45 = vsub.f32 %v771_v24, %v108_v40  ;;  %v131_v50 = vsub.f32 %v781_v26, %v115_v44  ;;  %v858_v44 = vld [vmem:[#allocation2 + $0x20] sm:$0xff]  ;;  %v344_v20 = vpack.c.bf16 %v874_v55, %v874_v55 }
  0x9f   :  { %v123_v14 = vsub.f32 %v776_v25, %v107_v41  ;;  %595 = vxpose.binary.xlu1.c.b16.cont [2/8] (short) (narrow) %v224_v4, %v166_v37, 16  ;;  %v220_v25 = vunpack.c.l.b16 %v146_v52  ;;  %v336_v47 = vpack.c.bf16 %v858_v44, %v858_v44 }
  0xa0   :  { %v140_v49 = vpack.c.bf16 %v124_v45, %v124_v45  ;;  %v147_v56 = vpack.c.bf16 %v131_v50, %v131_v50  ;;  %v332_v45 = vpack.c.bf16 %v854_v42, %v854_v42 }
  0xa1   :  { %v139_v19 = vpack.c.bf16 %v123_v14, %v123_v14  ;;  %v225_v26 = vpack.c.b16 %v220_v25, %v219_v58  ;;  %v864_v14 = vld [vmem:[#allocation2 + $0x28] sm:$0xff]  ;;  %v463_v50 = vunpack.c.l.b16 %v336_v47 }
  0xa2   :  { %v164_v54 = vunpack.c.l.b16 %v140_v49  ;;  %v221_v62 = vunpack.c.l.b16 %v147_v56  ;;  %v337_v48 = vpack.c.bf16 %v864_v14, %v864_v14  ;;  %v355_v49 = vunpack.c.l.b16 %v332_v45 }
  0xa3   :  { %v163_v53 = vunpack.c.l.b16 %v139_v19  ;;  %v356_v19 = vunpack.c.l.b16 %v333_v46 }
  0xa4   :  { %v93_v18 = vpop.xlane.xlu0 %92  ;;  %v464_v51 = vunpack.c.l.b16 %v337_v48 }
  0xa5   :  { %v116_v24 = vmul.f32 %v796_v38, %v93_v18  ;;  %v168_v57 = vpack.c.b16 %v164_v54, %v163_v53  ;;  %v357_v52 = vpack.c.b16 %v356_v19, %v355_v49  ;;  %v870_v54 = vld [vmem:[#allocation2 + $0x40] sm:$0xff]  ;;  %v872_v18 = vld [vmem:[#allocation2 + $0x48] sm:$0xff] }
  0xa6   :  { %v465_v53 = vpack.c.b16 %v464_v51, %v463_v50  ;;  %v340_v56 = vpack.c.bf16 %v870_v54, %v870_v54 }
  0xa7   :  { %v132_v59 = vsub.f32 %v792_v30, %v116_v24  ;;  %197 = vmatpush.bf16.msra.mxu0 %v168_v57  ;;  %369 = vmatpush.bf16.msra.mxu2 %v357_v52  ;;  %v341_v24 = vpack.c.bf16 %v872_v18, %v872_v18 }
  0xa8   :  { %v383_v25 = vunpack.c.l.b16 %v340_v56 }
  0xa9   :  { %v148_v60 = vpack.c.bf16 %v132_v59, %v132_v59  ;;  %v384_v59 = vunpack.c.l.b16 %v341_v24 }
  0xab   :  { %198 = vmatpush.bf16.msra.mxu0 %v167_v61  ;;  %v222_v63 = vunpack.c.l.b16 %v148_v60  ;;  %v483_v60 = vunpack.c.l.b16 %v344_v20 }
  0xad   :  { %v226_v0 = vpack.c.b16 %v222_v63, %v221_v62  ;;  %v385_v62 = vpack.c.b16 %v384_v59, %v383_v25  ;;  %v886_v63 = vld [vmem:[#allocation2 + $0x10] sm:$0xff] }
  0xaf   :  { %596 = vxpose.binary.xlu1.c.b16.cont [3/8] (short) (narrow) %v225_v26, %v167_v61, 16 }
  0xb0   :  { %199 = vmatpush.bf16.msra.mxu0 %v166_v37  ;;  %254 = vmatpush.bf16.msra.mxu1 %v226_v0 }
  0xb1   :  { %397 = vmatpush.bf16.msra.mxu3 %v385_v62 }
  0xb4   :  { %200 = vmatpush.bf16.msra.mxu0 %v806_v3  ;;  %255 = vmatpush.bf16.msra.mxu1 %v225_v26 }
  0xb8   :  { %256 = vmatpush.bf16.msra.mxu1 %v224_v4  ;;  %474 = vmatpush.bf16.msrb.mxu0 %v465_v53 }
  0xbc   :  { %257 = vmatpush.bf16.msra.mxu1 %v808_v5 }
  0xbf   :  { %597 = vxpose.binary.xlu1.c.b16.end [4/8] (short) (narrow) %v226_v0, %v168_v57, 16  ;;  %v880_v57 = vld [vmem:[#allocation2 + $0x68] sm:$0xff]  ;;  %v888_v0 = vld [vmem:[#allocation2 + $0x18] sm:$0xff] }
  0xc0   :  { %v345_v58 = vpack.c.bf16 %v880_v57, %v880_v57 }
  0xc2   :  { %v484_v61 = vunpack.c.l.b16 %v345_v58 }
  0xc4   :  { %v485_v26 = vpack.c.b16 %v484_v61, %v483_v60 }
  0xc6   :  { %494 = vmatpush.bf16.msrb.mxu1 %v485_v26 }
 0x13b   :  { %v598_v30 = vpop.trf.xlu1 }
 0x13c   :  { %578 = vmatmul.msk.bf16.vlgmr.msra.gmra.mxu0 %vm189_vm2, %v598_v30 }
 0x143   :  { %v599_v38 = vpop.trf.xlu1 }
 0x144   :  { %579 = vmatmul.msk.bf16.vlgmr.msra.gmra.mxu1 %vm189_vm2, %v599_v38  ;;  %v334_v38 = vpack.c.bf16 %v886_v63, %v886_v63 }
 0x1b9   :  { %v202_v1 = vpop.f32.mrf.mxu0 }
 0x1ba   :  { %v264_v2 = vmul.f32 0.0078125, %v202_v1  ;;  %v335_v1 = vpack.c.bf16 %v888_v0, %v888_v0 }
 0x1bc   :  { %v268_v6 = vsel %vm45_vm0, %v264_v2, -inf }
 0x1bd   :  { %269 = vmax.xlane.f32.xlu2 %v268_v6  ;;  %v896_v6 = vld [vmem:[#allocation2 + $0x58] sm:$0xff] }
 0x1c1   :  { %v204_v7 = vpop.f32.mrf.mxu0  ;;  %v259_v9 = vpop.f32.mrf.mxu1 }
 0x1c2   :  { %v265_v10 = vmul.f32 0.0078125, %v204_v7  ;;  %v266_v11 = vmul.f32 0.0078125, %v259_v9  ;;  %v343_v9 = vpack.c.bf16 %v896_v6, %v896_v6 }
 0x1c4   :  { %v271_v3 = vsel %vm45_vm0, %v265_v10, -inf  ;;  %v274_v15 = vsel %vm45_vm0, %v266_v11, -inf }
 0x1c5   :  { %272 = vmax.xlane.f32.xlu0 %v271_v3  ;;  %275 = vmax.xlane.f32.xlu2 %v274_v15  ;;  %v435_v15 = vunpack.c.l.b16 %v343_v9 }
 0x1c9   :  { %v261_v5 = vpop.f32.mrf.mxu1 }
 0x1ca   :  { %v267_v16 = vmul.f32 0.0078125, %v261_v5 }
 0x1cc   :  { %v277_v17 = vsel %vm45_vm0, %v267_v16, -inf }
 0x1cd   :  { %278 = vmax.xlane.f32.xlu0 %v277_v17 }
 0x230   :  { %v270_v21 = vpop.xlane.xlu2 %269 }
 0x231   :  { %v280_v22 = vsub.f32 %v264_v2, %v270_v21  ;;  %v894_v2 = vld [vmem:[#allocation2 + $0x50] sm:$0xff] }
 0x232   :  { %v342_v7 = vpack.c.bf16 %v894_v2, %v894_v2 }
 0x233   :  { %v284_v23 = vmul.f32 1.442695, %v280_v22 }
 0x234   :  { %v434_v3 = vunpack.c.l.b16 %v342_v7 }
 0x235   :  { %602 = vpow2.f32 %v284_v23 }
 0x238   :  { %v273_v27 = vpop.xlane.xlu0 %272  ;;  %v276_v28 = vpop.xlane.xlu2 %275 }
 0x239   :  { %v281_v29 = vsub.f32 %v265_v10, %v273_v27  ;;  %v282_v12 = vsub.f32 %v266_v11, %v276_v28  ;;  %v414_v10 = vunpack.c.l.b16 %v334_v38  ;;  %v415_v11 = vunpack.c.l.b16 %v335_v1  ;;  %v903_v28 = vld [vmem:[#allocation2 + $0x30] sm:$0xff] }
 0x23b   :  { %v838_v31 = vpop.eup %602  ;;  %v286_v13 = vmul.f32 1.442695, %v281_v29  ;;  %v288_v32 = vmul.f32 1.442695, %v282_v12  ;;  %v416_v5 = vpack.c.b16 %v415_v11, %v414_v10  ;;  %v905_v29 = vld [vmem:[#allocation2 + $0x38] sm:$0xff] }
 0x23c   :  { %v292_v33 = vsel %vm45_vm0, %v838_v31, 0.0 }
 0x23d   :  { %604 = vpow2.f32 %v286_v13  ;;  %293 = vadd.xlane.f32.xlu2 %v292_v33  ;;  %425 = vmatpush.bf16.msrb.mxu2 %v416_v5  ;;  %v338_v33 = vpack.c.bf16 %v903_v28, %v903_v28 }
 0x23e   :  { %606 = vpow2.f32 %v288_v32 }
 0x240   :  { %v279_v4 = vpop.xlane.xlu0 %278 }
 0x241   :  { %v283_v8 = vsub.f32 %v267_v16, %v279_v4  ;;  %v436_v16 = vpack.c.b16 %v435_v15, %v434_v3  ;;  %v339_v4 = vpack.c.bf16 %v905_v29, %v905_v29 }
 0x243   :  { %v842_v34 = vpop.eup %604  ;;  %v290_v35 = vmul.f32 1.442695, %v283_v8  ;;  %445 = vmatpush.bf16.msrb.mxu3 %v436_v16 }
 0x244   :  { %v844_v36 = vpop.eup %606  ;;  %v295_v37 = vsel %vm45_vm0, %v842_v34, 0.0 }
 0x245   :  { %608 = vpow2.f32 %v290_v35  ;;  %v298_v39 = vsel %vm45_vm0, %v844_v36, 0.0  ;;  %296 = vadd.xlane.f32.xlu0 %v295_v37  ;;  %v512_v37 = vunpack.c.l.b16 %v338_v33 }
 0x246   :  { %299 = vadd.xlane.f32.xlu2 %v298_v39  ;;  %v912_v39 = vld [vmem:[#allocation2 + $0x70] sm:$0xff] }
 0x247   :  { %v346_v48 = vpack.c.bf16 %v912_v39, %v912_v39 }
 0x249   :  { %v532_v53 = vunpack.c.l.b16 %v346_v48 }
 0x24b   :  { %v850_v40 = vpop.eup %608 }
 0x24c   :  { %v301_v41 = vsel %vm45_vm0, %v850_v40, 0.0 }
 0x24d   :  { %302 = vadd.xlane.f32.xlu0 %v301_v41  ;;  %v914_v41 = vld [vmem:[#allocation2 + $0x78] sm:$0xff] }
 0x24e   :  { %v347_v49 = vpack.c.bf16 %v914_v41, %v914_v41 }
 0x2b0   :  { %v294_v30 = vpop.xlane.xlu2 %293 }
 0x2b1   :  { %610 = vrcp.f32 %v294_v30 }
 0x2b7   :  { %v611_v21 = vpop.eup %610 }
 0x2b8   :  { %v297_v17 = vpop.xlane.xlu0 %296  ;;  %v308_v23 = vmul.f32 %v611_v21, %v838_v31  ;;  %v513_v31 = vunpack.c.l.b16 %v339_v4 }
 0x2b9   :  { %v300_v22 = vpop.xlane.xlu2 %299  ;;  %612 = vrcp.f32 %v297_v17 }
 0x2ba   :  { %614 = vrcp.f32 %v300_v22  ;;  %v312_v12 = vpack.c.bf16 %v308_v23, %v308_v23  ;;  %v514_v47 = vpack.c.b16 %v513_v31, %v512_v37 }
 0x2bc   :  { %v350_v45 = vunpack.c.l.b16 %v312_v12 }
 0x2bf   :  { %v613_v27 = vpop.eup %612 }
 0x2c0   :  { %v309_v13 = vmul.f32 %v613_v27, %v842_v34  ;;  %v303_v32 = vpop.xlane.xlu0 %302  ;;  %v615_v8 = vpop.eup %614 }
 0x2c1   :  { %616 = vrcp.f32 %v303_v32  ;;  %v310_v46 = vmul.f32 %v615_v8, %v844_v36  ;;  %v533_v36 = vunpack.c.l.b16 %v347_v49 }
 0x2c2   :  { %v313_v35 = vpack.c.bf16 %v309_v13, %v309_v13 }
 0x2c3   :  { %v314_v51 = vpack.c.bf16 %v310_v46, %v310_v46  ;;  %v534_v58 = vpack.c.b16 %v533_v36, %v532_v53 }
 0x2c4   :  { %v351_v34 = vunpack.c.l.b16 %v313_v35 }
 0x2c5   :  { %v378_v24 = vunpack.c.l.b16 %v314_v51 }
 0x2c6   :  { %v352_v19 = vpack.c.b16 %v351_v34, %v350_v45 }
 0x2c7   :  { %v617_v50 = vpop.eup %616 }
 0x2c8   :  { %v311_v52 = vmul.f32 %v617_v50, %v850_v40  ;;  %580 = vmatmul.msk.bf16.vlgmr.msra.gmra.mxu2 %vm45_vm0, %v352_v19  ;;  %584 = vmatmul.msk.bf16.vlgmr.msrb.gmra.mxu0 %vm45_vm0, %v352_v19 }
 0x2c9   :  { %523 = vmatpush.bf16.msra.mxu2 %v514_v47 }
 0x2ca   :  { %v315_v56 = vpack.c.bf16 %v311_v52, %v311_v52 }
 0x2cc   :  { %v379_v20 = vunpack.c.l.b16 %v315_v56 }
 0x2ce   :  { %v380_v25 = vpack.c.b16 %v379_v20, %v378_v24 }
 0x2d0   :  { %581 = vmatmul.msk.bf16.vlgmr.msra.gmra.mxu3 %vm45_vm0, %v380_v25  ;;  %585 = vmatmul.msk.bf16.vlgmr.msrb.gmra.mxu1 %vm45_vm0, %v380_v25 }
 0x2d1   :  { %543 = vmatpush.bf16.msra.mxu3 %v534_v58 }
 0x2d8   :  { %582 = vmatmul.msk.bf16.vlgmr.msrb.gmra.mxu2 %vm45_vm0, %v352_v19 }
 0x2e0   :  { %583 = vmatmul.msk.bf16.vlgmr.msrb.gmra.mxu3 %vm45_vm0, %v380_v25 }
 0x2e8   :  { %586 = vmatmul.msk.bf16.vlgmr.msra.gmra.mxu2 %vm45_vm0, %v352_v19 }
 0x2f0   :  { %587 = vmatmul.msk.bf16.vlgmr.msra.gmra.mxu3 %vm45_vm0, %v380_v25 }
 0x345   :  { %v476_v40 = vpop.f32.mrf.mxu0 }
 0x346   :  { %v501_v59 = vadd.f32 %v476_v40, %v858_v44 }
 0x348   :  { %506 = vst.msk [vmem:[#allocation5 + $0x20] sm:$0xff] %vm45_vm0, %v501_v59 }
 0x34b   :  { %v371_v60 = vpop.f32.mrf.mxu2 }
 0x34c   :  { %v404_v61 = vadd.f32 %v371_v60, %v854_v42 }
 0x34d   :  { %v478_v62 = vpop.f32.mrf.mxu0  ;;  %v496_v26 = vpop.f32.mrf.mxu1 }
 0x34e   :  { %408 = vst.msk [vmem:[#allocation5] sm:$0xff] %vm45_vm0, %v404_v61  ;;  %v502_v30 = vadd.f32 %v478_v62, %v864_v14  ;;  %v503_v38 = vadd.f32 %v496_v26, %v874_v55 }
 0x350   :  { %507 = vst.msk [vmem:[#allocation5 + $0x28] sm:$0xff] %vm45_vm0, %v502_v30 }
 0x351   :  { %508 = vst.msk [vmem:[#allocation5 + $0x60] sm:$0xff] %vm45_vm0, %v503_v38 }
 0x353   :  { %v373_v1 = vpop.f32.mrf.mxu2  ;;  %v399_v7 = vpop.f32.mrf.mxu3 }
 0x354   :  { %v405_v44 = vadd.f32 %v373_v1, %v856_v43  ;;  %v406_v9 = vadd.f32 %v399_v7, %v870_v54 }
 0x355   :  { %v498_v10 = vpop.f32.mrf.mxu1 }
 0x356   :  { %409 = vst.msk [vmem:[#allocation5 + $0x8] sm:$0xff] %vm45_vm0, %v405_v44  ;;  %v504_v42 = vadd.f32 %v498_v10, %v880_v57 }
 0x357   :  { %410 = vst.msk [vmem:[#allocation5 + $0x40] sm:$0xff] %vm45_vm0, %v406_v9 }
 0x358   :  { %509 = vst.msk [vmem:[#allocation5 + $0x68] sm:$0xff] %vm45_vm0, %v504_v42 }
 0x35b   :  { %v401_v14 = vpop.f32.mrf.mxu3  ;;  %v427_v55 = vpop.f32.mrf.mxu2 }
 0x35c   :  { %v407_v11 = vadd.f32 %v401_v14, %v872_v18  ;;  %v452_v3 = vadd.f32 %v427_v55, %v886_v63 }
 0x35e   :  { %411 = vst.msk [vmem:[#allocation5 + $0x48] sm:$0xff] %vm45_vm0, %v407_v11 }
 0x35f   :  { %457 = vst.msk [vmem:[#allocation5 + $0x10] sm:$0xff] %vm45_vm0, %v452_v3 }
 0x363   :  { %v429_v43 = vpop.f32.mrf.mxu2  ;;  %v447_v54 = vpop.f32.mrf.mxu3 }
 0x364   :  { %v453_v15 = vadd.f32 %v429_v43, %v888_v0  ;;  %v454_v57 = vadd.f32 %v447_v54, %v894_v2 }
 0x366   :  { %458 = vst.msk [vmem:[#allocation5 + $0x18] sm:$0xff] %vm45_vm0, %v453_v15 }
 0x367   :  { %459 = vst.msk [vmem:[#allocation5 + $0x50] sm:$0xff] %vm45_vm0, %v454_v57 }
 0x36b   :  { %v449_v5 = vpop.f32.mrf.mxu3  ;;  %v525_v16 = vpop.f32.mrf.mxu2 }
 0x36c   :  { %v455_v18 = vadd.f32 %v449_v5, %v896_v6  ;;  %v550_v63 = vadd.f32 %v525_v16, %v903_v28 }
 0x36e   :  { %460 = vst.msk [vmem:[#allocation5 + $0x58] sm:$0xff] %vm45_vm0, %v455_v18 }
 0x36f   :  { %555 = vst.msk [vmem:[#allocation5 + $0x30] sm:$0xff] %vm45_vm0, %v550_v63 }
 0x373   :  { %v527_v17 = vpop.f32.mrf.mxu2  ;;  %v545_v21 = vpop.f32.mrf.mxu3 }
 0x374   :  { %v551_v0 = vadd.f32 %v527_v17, %v905_v29  ;;  %v552_v2 = vadd.f32 %v545_v21, %v912_v39 }
 0x376   :  { %556 = vst.msk [vmem:[#allocation5 + $0x38] sm:$0xff] %vm45_vm0, %v551_v0 }
 0x377   :  { %557 = vst.msk [vmem:[#allocation5 + $0x70] sm:$0xff] %vm45_vm0, %v552_v2 }
 0x37b   :  { %v547_v6 = vpop.f32.mrf.mxu3 }
 0x37c   :  { %v553_v22 = vadd.f32 %v547_v6, %v914_v41 }
 0x37e   :  { %558 = vst.msk [vmem:[#allocation5 + $0x78] sm:$0xff] %vm45_vm0, %v553_v22 }
 0x37f   :  { %571 = dma.vmem_to_hbm [thread:$0]  %s564_s20, 2048, %s566_s23, [#allocation4], %s671_s14, %s671_s14, %s672_s15  }
 0x380   :  { %668 = dma.done.wait [#allocation4], 2048  }
 0x381   :  { %669 = vsyncadd [#allocation4], 4294965248 }
 0x382   :  { %576 = vsyncpa [#allocation3], 1 }
 0x383   :  { %577 = vsyncpa [#allocation4], 1 }

</bundles_post_ra>
